<compile_context>
chip_gen: v5e
topology: v5e:2x2
jax: 0.10.0
libtpu: 0.0.40
codegen_flags: <defaults>
</compile_context>

<pallas_src>
import math

import jax
import jax.numpy as jnp
from jax.experimental import pallas as pl
from jax.experimental.pallas import tpu as pltpu


# ----------------------------------------------------------------------------
# Pallas kernel: one (seq-tile, batch-element) block of  out = x + pe
# ----------------------------------------------------------------------------
def _pe_add_kernel(x_ref, pe_ref, o_ref):
    # x_ref/o_ref: (Tb, D) — batch dim squeezed away; pe_ref: (Tb, D) shared PE tile.
    o_ref[...] = x_ref[...] + pe_ref[...].astype(x_ref.dtype)


def _pick_seq_tile(T, D, itemsize, target_bytes=2 << 20):
    """Largest sublane-aligned divisor of T whose (Tb, D) block is ~<= target_bytes.

    f32 -> multiples of 8, bf16 -> 16, 8-bit -> 32.  If T isn't aligned at all we fall back to
    a single full-extent block (always layout-legal since it equals the array dim).
    """
    align = max(8, 32 // max(1, itemsize))
    if T % align != 0:
        return T  # ragged/short seq (e.g. T=7): one full-extent block
    max_rows = max(align, (target_bytes // max(1, D * itemsize)) // align * align)
    best = align
    for t in range(align, T + 1, align):
        if T % t == 0 and t <= max_rows:
            best = t
    return best


@jax.jit
def positional_encoding_forward(x, pe):
    """x: (B, T, D); pe: (max_len, D) precomputed table. Returns x + pe[None, :T, :]."""
    B, T, D = x.shape
    itemsize = jnp.dtype(x.dtype).itemsize
    Tb = _pick_seq_tile(T, D, itemsize)
    n_seq = T // Tb

    if Tb % 8 == 0:
        # Common path: pass the whole table; the BlockSpec only touches the first T rows.
        pe_in = pe
    else:
        # Ragged short T: the (Tb, D) block must equal the full array dims to be legal,
        # so slice the table down to exactly (T, D).  Tiny copy (T is small here).
        pe_in = jax.lax.slice(pe, (0, 0), (T, D))

    # Grid: seq tiles outermost, batch innermost -> pe block index constant across the inner
    # loop -> Pallas keeps it resident.  Guarantee the "parallel" (megacore) axis has >=2 blocks.
    grid = (n_seq, B)
    if n_seq >= 2:
        dim_sems = ("parallel", "arbitrary")
    else:
        dim_sems = ("arbitrary", "parallel")

    return pl.pallas_call(
        _pe_add_kernel,
        out_shape=jax.ShapeDtypeStruct((B, T, D), x.dtype),
        grid_spec=pltpu.PrefetchScalarGridSpec(
            num_scalar_prefetch=0,
            grid=grid,
            in_specs=[
                pl.BlockSpec((pl.Squeezed(), Tb, D), lambda t, b: (b, t, 0)),
                pl.BlockSpec((Tb, D), lambda t, b: (t, 0)),
            ],
            out_specs=pl.BlockSpec((pl.Squeezed(), Tb, D), lambda t, b: (b, t, 0)),
        ),
        compiler_params=pltpu.CompilerParams(dimension_semantics=dim_sems),
    )(x, pe_in)


# ----------------------------------------------------------------------------
# Module-equivalent wrapper
# ----------------------------------------------------------------------------
class PositionalEncoding:
    """JAX/Pallas equivalent of the PyTorch PositionalEncoding module (eval mode)."""

    def __init__(self, d_model, dropout=0.0, max_len=5000):
        del dropout  # TODO(synk): nn.Dropout is identity at inference; train-mode PRNG dropout not implemented.
        pos = jnp.arange(max_len, dtype=jnp.float32)[:, None]                    # (max_len, 1)
        div = jnp.exp(jnp.arange(0, d_model, 2, dtype=jnp.float32)
                      * (-math.log(10000.0) / d_model))                          # (ceil(d/2),)
        ang = pos * div                                                          # (max_len, ceil(d/2))
        half = ang.shape[1]
        # Interleave: pe[:, 0::2] = sin, pe[:, 1::2] = cos  (matches PyTorch for even d_model).
        pe = jnp.stack([jnp.sin(ang), jnp.cos(ang)], axis=-1).reshape(max_len, 2 * half)
        self.pe = pe[:, :d_model].astype(jnp.float32)                            # register_buffer

    def __call__(self, x):
        return positional_encoding_forward(x, self.pe)


if __name__ == "__main__":
    key = jax.random.PRNGKey(0)
    module = PositionalEncoding(d_model=128, dropout=0.1, max_len=5000)

    # Case 1: docstring-like shape (batch=2, 7 tokens, d_model=128) -> ragged-T path.
    B, T, D = 2, 7, 128
    x = jax.random.normal(key, (B, T, D), jnp.float32)
    y = jax.block_until_ready(module(x))
    ref = x + module.pe[None, :T, :]
    assert y.shape == (B, T, D), y.shape
    assert jnp.all(jnp.isfinite(y))
    assert jnp.allclose(y, ref, atol=1e-6, rtol=1e-6), float(jnp.max(jnp.abs(y - ref)))

    # Case 2: sublane-aligned seq length -> main path (full pe table, no pre-slice).
    B2, T2 = 2, 16
    x2 = jax.random.normal(jax.random.PRNGKey(1), (B2, T2, D), jnp.float32)
    y2 = jax.block_until_ready(module(x2))
    ref2 = x2 + module.pe[None, :T2, :]
    assert y2.shape == (B2, T2, D), y2.shape
    assert jnp.allclose(y2, ref2, atol=1e-6, rtol=1e-6), float(jnp.max(jnp.abs(y2 - ref2)))

    print("KERNEL_OK")
</pallas_src>

<mosaic_0001>
module attributes {stable_mosaic.version = 11 : i64} {
  func.func @_pe_add_kernel(%arg0: i32, %arg1: i32, %arg2: memref<1x7x128xf32, #tpu.memory_space<vmem>>, %arg3: memref<7x128xf32, #tpu.memory_space<vmem>>, %arg4: memref<1x7x128xf32, #tpu.memory_space<vmem>>) attributes {dimension_semantics = [#tpu.dimension_semantics<arbitrary>, #tpu.dimension_semantics<parallel>], iteration_bounds = array<i64: 1, 2>, scalar_prefetch = 0 : i64, scratch_operands = 0 : i64, tpu.core_type = #tpu.core_type<tc>, window_params = [{transform_indices = @transform_0, window_bounds = array<i64: 1, 7, 128>}, {transform_indices = @transform_1, window_bounds = array<i64: 7, 128>}, {transform_indices = @transform_2, window_bounds = array<i64: 1, 7, 128>}]} {
    %c0 = arith.constant 0 : index
    %c0_0 = arith.constant 0 : index
    %c0_1 = arith.constant 0 : index
    %0 = vector.load %arg2[%c0, %c0_0, %c0_1] : memref<1x7x128xf32, #tpu.memory_space<vmem>>, vector<1x7x128xf32>
    %1 = vector.shape_cast %0 : vector<1x7x128xf32> to vector<7x128xf32>
    %c0_2 = arith.constant 0 : index
    %c0_3 = arith.constant 0 : index
    %2 = vector.load %arg3[%c0_2, %c0_3] : memref<7x128xf32, #tpu.memory_space<vmem>>, vector<7x128xf32>
    %3 = arith.addf %1, %2 : vector<7x128xf32>
    %c0_4 = arith.constant 0 : index
    %c0_5 = arith.constant 0 : index
    %c0_6 = arith.constant 0 : index
    %4 = vector.load %arg4[%c0_4, %c0_5, %c0_6] : memref<1x7x128xf32, #tpu.memory_space<vmem>>, vector<1x7x128xf32>
    %5 = vector.shape_cast %4 : vector<1x7x128xf32> to vector<7x128xf32>
    %6 = vector.shape_cast %3 : vector<7x128xf32> to vector<1x7x128xf32>
    tpu.vector_store %arg4[%c0_4, %c0_5, %c0_6], %6 {strides = array<i32>} : memref<1x7x128xf32, #tpu.memory_space<vmem>>, vector<1x7x128xf32>,
    return
  }
  func.func @transform_0(%arg0: i32, %arg1: i32) -> (i32, i32, i32) {
    %c0_i32 = arith.constant 0 : i32
    %c0_i32_0 = arith.constant 0 : i32
    return %arg1, %arg0, %c0_i32 : i32, i32, i32
  }
  func.func @transform_1(%arg0: i32, %arg1: i32) -> (i32, i32) {
    %c0_i32 = arith.constant 0 : i32
    %c0_i32_0 = arith.constant 0 : i32
    return %arg0, %c0_i32 : i32, i32
  }
  func.func @transform_2(%arg0: i32, %arg1: i32) -> (i32, i32, i32) {
    %c0_i32 = arith.constant 0 : i32
    %c0_i32_0 = arith.constant 0 : i32
    return %arg1, %arg0, %c0_i32 : i32, i32, i32
  }
}

</mosaic_0001>

<bundles_post_ra>
// kernel: positional_encoding_forward.1
= control target key start
LH: loop header
LB: loop body
LE: loop exit
PB: predicated region body
PF: predicated region fallthrough
CT: control target
= control target key end

     0   :  { %s354_s9 = smov 0   ;;  %s331_s10 = smov 0   ;;  %s368_s0 = inlined_call_operand.vmem [shape: f32[2,7,128], index: 0, kind: input, shape index: {}]   ;;  %s369_s1 = inlined_call_operand.vmem [shape: f32[7,128], index: 1, kind: input, shape index: {}]   ;;  %s370_s2 = inlined_call_operand.vmem [shape: f32[2,7,128], index: 2, kind: output, shape index: {}]  }
   0x1   :  { %s335_s11 = smov 0  }
   0x2 LB: > { %s21_s12 = sadd.s32 1, %s333_s10  ;;  %p286_p0 = scmp.ge.s32.totalorder %s337_s11, 1  ;;  %s337_s11 = sphi %s335_s11, %s12_s11   ;;  %s333_s10 = sphi %s331_s10, %s332_s10   ;;  %s329_s9 = sphi %s354_s9, %s371_s9  }
   0x3   : > { %p22_p1 = scmp.ge.s32.totalorder %s21_s12, 2  ;;  %p139_p2 = scmp.lt.s32.totalorder %s337_s11, 3 }
   0x5   : > { %s373_s12 = smov (%p22_p1, %s21_s12), 0  ;;  %p140_p3 = pnand %p286_p0, %p139_p2 }
   0x6   : > { %p169_p4 = scmp.lt.s32.totalorder (!%p140_p3), %s329_s9, 1 }
   0x7   : > { %143 = sbr.rel (%p140_p3) target bundleno = 19 (0x13), region = 28 }
   0xc   : > { %s375_s9 = smov (!%p169_p4, %s329_s9), 1  ;;  %v188_v0 = vld [vmem:[%s369_s1] sm:$0x7f] }
   0xd   : > { %s287_s13 = sshll.u32 %s375_s9, 3 }
   0xe   : > { %s175_s18 = scalar_lea.vmem %s368_s0, %s287_s13  ;;  %s186_s21 = scalar_lea.vmem %s370_s2, %s287_s13 }
   0xf   : > { %v187_v1 = vld [vmem:[%s175_s18] sm:$0x7f] }
  0x10   : > { %v189_v2 = vadd.f32 %v188_v0, %v187_v1 }
  0x12   : > { %190 = vst [vmem:[%s186_s21] sm:$0x7f] %v189_v2 }
  0x13 PF: > { %s12_s11 = sadd.s32 1, %s337_s11   ;;  %s371_s9 = smov %s333_s10 }
  0x14   : > { %p9_p5 = scmp.ge.s32.totalorder %s12_s11, 4   ;;  %s332_s10 = smov %s373_s12  }
  0x16   :  { %11 = sbr.rel (!%p9_p5) target bundleno = 2 (0x2), region = 61 }

</bundles_post_ra>
